<compile_context>
chip_gen: v6e
topology: v6e:2x2x1
jax: 0.10.0
libtpu: 0.0.40
codegen_flags: <defaults>
</compile_context>

<pallas_src>
import jax
import jax.numpy as jnp
from jax.experimental import pallas as pl
from jax.experimental.pallas import tpu as pltpu


def _round_up(v: int, m: int) -> int:
    return ((v + m - 1) // m) * m


# --------------------------------------------------------------------------
# Kernel 1: vertex -> edge aggregation (parallel over O tiles, reduce over N)
#   edge[:, o] = De^{-1} * sum_over_n_tiles( H_tile^T @ (x_tile @ theta[:, o]) )
# --------------------------------------------------------------------------
def _hyconv_v2e_kernel(x_ref, theta_ref, h_ref, de_ref, edge_ref, acc_ref):
    @pl.when(pl.program_id(1) == 0)
    def _init():
        acc_ref[...] = jnp.zeros_like(acc_ref)

    # feature transform for this row tile (MXU, f32 accumulation), no bias
    y = jnp.dot(x_ref[...], theta_ref[...],
                preferred_element_type=jnp.float32)          # (TILE_N, TILE_O)
    y = y.astype(x_ref.dtype)

    # H_tile^T @ y WITHOUT materializing a transpose: contract axis 0 of both.
    h = h_ref[...].astype(y.dtype)                           # int8 -> compute
    acc_ref[...] += jax.lax.dot_general(
        h, y,
        dimension_numbers=(((0,), (0,)), ((), ())),
        preferred_element_type=jnp.float32)                  # (Ep, TILE_O)

    @pl.when(pl.program_id(1) == pl.num_programs(1) - 1)
    def _finalize():
        # fold De^{-1} and cast ONCE to compute dtype for kernel 2
        edge_ref[...] = (acc_ref[...] * de_ref[...]).astype(edge_ref.dtype)


# --------------------------------------------------------------------------
# Kernel 2: edge -> vertex aggregation (parallel over N tiles)
#   out_tile = Dv_tile^{-1} * (H_tile @ edge) + bias
# --------------------------------------------------------------------------
def _hyconv_e2v_kernel(h_ref, edge_ref, dv_ref, bias_ref, out_ref):
    h = h_ref[...].astype(edge_ref.dtype)                    # int8 -> compute
    agg = jnp.dot(h, edge_ref[...],
                  preferred_element_type=jnp.float32)        # (TILE_N, Op)
    out_ref[...] = agg * dv_ref[...] + bias_ref[...]


def hyconv(x, theta, bias, H, *, compute_dtype=jnp.bfloat16,
           tile_n=512, tile_o=512, h_storage_dtype=jnp.int8):
    """HyConv forward.  x:(N,C) theta:(C,O) bias:(O,)|None H:(N,E) -> (N,O) f32.

    H is assumed to be a binary (0/1) incidence matrix so it can be stored as
    int8 (exact).  For weighted/non-binary H pass h_storage_dtype=compute_dtype.
    Caller precondition (same as the PyTorch reference): every vertex and
    every hyperedge has degree >= 1 (otherwise degree inverses are inf).
    """
    N, C = x.shape
    Ct, O = theta.shape
    Nh, E = H.shape
    assert Ct == C and Nh == N
    if bias is None:
        bias = jnp.zeros((O,), jnp.float32)

    # Degree inverses from the UN-padded incidence matrix (matches torch).
    dv_inv = (1.0 / jnp.sum(H, axis=1)).astype(jnp.float32)  # (N,)
    de_inv = (1.0 / jnp.sum(H, axis=0)).astype(jnp.float32)  # (E,)

    # Lane-dense, 128-aligned padding; row dim padded to a multiple of 32 so
    # int8 H tiles line up with the native (32, 128) tiling (also satisfies
    # bf16/f32 sublane packing).
    Cp = _round_up(C, 128)
    Op = _round_up(O, 128)
    Ep = _round_up(E, 128)
    TILE_N = _round_up(min(tile_n, _round_up(N, 32)), 32)
    Np = _round_up(N, TILE_N)
    num_n = Np // TILE_N

    # Output-channel tile for kernel 1 (parallel axis).  Must divide Op.
    TILE_O = Op
    if Op > tile_o:
        cand = max(128, (tile_o // 128) * 128)
        while Op % cand:
            cand -= 128
        TILE_O = cand
    num_o = Op // TILE_O

    def pad2(a, rows, cols):
        return jnp.pad(a, ((0, rows - a.shape[0]), (0, cols - a.shape[1])))

    x_p = pad2(x.astype(compute_dtype), Np, Cp)                  # (Np, Cp)
    th_p = pad2(theta.astype(compute_dtype), Cp, Op)             # (Cp, Op)
    h_p = pad2(H, Np, Ep).astype(h_storage_dtype)                # (Np, Ep) int8
    b_p = pad2(bias.reshape(1, O).astype(jnp.float32), 1, Op)    # (1, Op)
    de_p = pad2(de_inv.reshape(E, 1), Ep, 1)                     # (Ep, 1)
    dv_p = pad2(dv_inv.reshape(N, 1), Np, 1)                     # (Np, 1)

    item = jnp.dtype(compute_dtype).itemsize
    h_item = jnp.dtype(h_storage_dtype).itemsize

    # -- explicit VMEM budgets (double-buffered inputs/outputs + scratch) ----
    vmem_k1 = (2 * TILE_N * Cp * item        # x tile
               + 2 * Cp * TILE_O * item      # theta block
               + 2 * TILE_N * Ep * h_item    # H tile
               + 2 * Ep * 4                  # De^{-1}
               + 2 * Ep * TILE_O * item      # edge out block
               + Ep * TILE_O * 4)            # f32 accumulator scratch
    vmem_k2 = (2 * TILE_N * Ep * h_item      # H tile
               + 2 * Ep * Op * item          # edge block
               + 2 * TILE_N * 4              # Dv^{-1} tile
               + 2 * Op * 4                  # bias
               + 2 * TILE_N * Op * 4)        # out tile

    def _limit(b):
        return int(min(96 * 2 ** 20, max(32 * 2 ** 20, 2 * b)))

    cost_v2e = pl.CostEstimate(
        flops=2 * Np * Cp * Op + 2 * Np * Ep * Op,
        transcendentals=0,
        bytes_accessed=num_o * (Np * Cp * item + Np * Ep * h_item + Ep * 4)
        + Cp * Op * item + Ep * Op * item,
    )
    cost_e2v = pl.CostEstimate(
        flops=2 * Np * Ep * Op,
        transcendentals=0,
        bytes_accessed=Np * Ep * h_item + Ep * Op * item
        + Np * 4 + Op * 4 + Np * Op * 4,
    )

    # ---- kernel 1: accumulate hyperedge features over row tiles -----------
    edge_feat = pl.pallas_call(
        _hyconv_v2e_kernel,
        out_shape=jax.ShapeDtypeStruct((Ep, Op), compute_dtype),
        grid=(num_o, num_n),
        in_specs=[
            pl.BlockSpec((TILE_N, Cp), lambda o, n: (n, 0)),   # x row tile
            pl.BlockSpec((Cp, TILE_O), lambda o, n: (0, o)),   # theta O-block
            pl.BlockSpec((TILE_N, Ep), lambda o, n: (n, 0)),   # H row tile
            pl.BlockSpec((Ep, 1), lambda o, n: (0, 0)),        # De^{-1}
        ],
        out_specs=pl.BlockSpec((Ep, TILE_O), lambda o, n: (0, o)),
        scratch_shapes=[pltpu.VMEM((Ep, TILE_O), jnp.float32)],
        compiler_params=pltpu.CompilerParams(
            dimension_semantics=("parallel", "arbitrary"),
            vmem_limit_bytes=_limit(vmem_k1)),
        cost_estimate=cost_v2e,
    )(x_p, th_p, h_p, de_p)

    # ---- kernel 2: scatter edge features back to vertices (parallel) ------
    out_p = pl.pallas_call(
        _hyconv_e2v_kernel,
        out_shape=jax.ShapeDtypeStruct((Np, Op), jnp.float32),
        grid=(num_n,),
        in_specs=[
            pl.BlockSpec((TILE_N, Ep), lambda i: (i, 0)),      # H row tile
            pl.BlockSpec((Ep, Op), lambda i: (0, 0)),          # edge features
            pl.BlockSpec((TILE_N, 1), lambda i: (i, 0)),       # Dv^{-1} tile
            pl.BlockSpec((1, Op), lambda i: (0, 0)),           # bias
        ],
        out_specs=pl.BlockSpec((TILE_N, Op), lambda i: (i, 0)),
        compiler_params=pltpu.CompilerParams(
            dimension_semantics=("parallel",),
            vmem_limit_bytes=_limit(vmem_k2)),
        cost_estimate=cost_e2v,
    )(h_p, edge_feat, dv_p, b_p)

    return out_p[:N, :O]


def hyconv_reference(x, theta, bias, H):
    y = x @ theta + bias[None, :]
    dv_inv = 1.0 / H.sum(axis=1)
    de_inv = 1.0 / H.sum(axis=0)
    HDv = H * dv_inv[:, None]
    HDe = H * de_inv[None, :]
    y = HDe.T @ y
    return HDv @ y


if __name__ == "__main__":
    key = jax.random.PRNGKey(0)
    k_x, k_h, k_theta = jax.random.split(key, 3)

    N, E = 40, 8       # vertices, hyperedges
    C, O = 32, 160     # in_ch, out_ch (O > 128 so the O grid axis is exercised)

    x = jax.random.normal(k_x, (N, C), dtype=jnp.float32)

    # random incidence matrix; guarantee every vertex and edge has degree >= 1
    H = (jax.random.uniform(k_h, (N, E)) > 0.5).astype(jnp.float32)
    H = H.at[:, 0].set(1.0)
    H = H.at[0, :].set(1.0)

    # xavier_uniform_ for theta, zeros for bias (deterministic, in-script)
    bound = (6.0 / (C + O)) ** 0.5
    theta = jax.random.uniform(k_theta, (C, O), minval=-bound, maxval=bound,
                               dtype=jnp.float32)
    bias = jnp.zeros((O,), dtype=jnp.float32)

    ref = hyconv_reference(x, theta, bias, H)

    # f32 path with small tiles so both grid axes of kernel 1 (O parallel,
    # N reduction) and the parallel grid of kernel 2 run over several tiles.
    out_f32 = jax.block_until_ready(
        hyconv(x, theta, bias, H, compute_dtype=jnp.float32,
               tile_n=32, tile_o=128))
    assert out_f32.shape == (N, O)
    assert jnp.allclose(out_f32, ref, atol=1e-4, rtol=1e-4), "f32 mismatch"

    # default bf16-MXU path (f32 accumulation, int8 H) -- bf16-level tolerance.
    out_bf16 = jax.block_until_ready(hyconv(x, theta, bias, H))
    assert out_bf16.shape == (N, O)
    assert jnp.allclose(out_bf16, ref, atol=5e-2, rtol=5e-2), "bf16 mismatch"

    print("KERNEL_OK")
</pallas_src>

<mosaic_0001>
module attributes {stable_mosaic.version = 11 : i64} {
  func.func @_hyconv_v2e_kernel(%arg0: i32, %arg1: i32, %arg2: memref<32x128xf32, #tpu.memory_space<vmem>>, %arg3: memref<128x128xf32, #tpu.memory_space<vmem>>, %arg4: memref<32x128xi8, #tpu.memory_space<vmem>>, %arg5: memref<128x1xf32, #tpu.memory_space<vmem>>, %arg6: memref<128x128xf32, #tpu.memory_space<vmem>>, %arg7: memref<128x128xf32, #tpu.memory_space<vmem>>) attributes {dimension_semantics = [#tpu.dimension_semantics<parallel>, #tpu.dimension_semantics<arbitrary>], iteration_bounds = array<i64: 2, 2>, scalar_prefetch = 0 : i64, scratch_operands = 1 : i64, tpu.core_type = #tpu.core_type<tc>, window_params = [{transform_indices = @transform_0, window_bounds = array<i64: 32, 128>}, {transform_indices = @transform_1, window_bounds = array<i64: 128, 128>}, {transform_indices = @transform_2, window_bounds = array<i64: 32, 128>}, {pipeline_mode = #tpu.pipeline_mode<synchronous>, transform_indices = @transform_3, window_bounds = array<i64: 128, 1>}, {transform_indices = @transform_4, window_bounds = array<i64: 128, 128>}]} {
    %c0_i32 = arith.constant 0 : i32
    %0 = arith.cmpi eq, %arg1, %c0_i32 : i32
    %1 = arith.extui %0 : i1 to i32
    %c0_i32_0 = arith.constant 0 : i32
    %2 = arith.cmpi ne, %1, %c0_i32_0 : i32
    scf.if %2 {
      %cst_12 = arith.constant 0.000000e+00 : f32
      %15 = vector.broadcast %cst_12 : f32 to vector<128x128xf32>
      %c0_13 = arith.constant 0 : index
      %c0_14 = arith.constant 0 : index
      %16 = vector.load %arg7[%c0_13, %c0_14] : memref<128x128xf32, #tpu.memory_space<vmem>>, vector<128x128xf32>
      tpu.vector_store %arg7[%c0_13, %c0_14], %15 {strides = array<i32>} : memref<128x128xf32, #tpu.memory_space<vmem>>, vector<128x128xf32>,
    } else {
    }
    %c0 = arith.constant 0 : index
    %c0_1 = arith.constant 0 : index
    %3 = vector.load %arg2[%c0, %c0_1] : memref<32x128xf32, #tpu.memory_space<vmem>>, vector<32x128xf32>
    %c0_2 = arith.constant 0 : index
    %c0_3 = arith.constant 0 : index
    %4 = vector.load %arg3[%c0_2, %c0_3] : memref<128x128xf32, #tpu.memory_space<vmem>>, vector<128x128xf32>
    %cst = arith.constant dense<0.000000e+00> : vector<32x128xf32>
    %5 = tpu.matmul %3, %4, %cst {dimension_numbers = #tpu.dot_dimension_numbers<[1], [0], [0], [1], [0, 0, 1, 1], [], []>} : vector<32x128xf32>, vector<128x128xf32>, vector<32x128xf32> -> vector<32x128xf32>
    %c0_4 = arith.constant 0 : index
    %c0_5 = arith.constant 0 : index
    %6 = vector.load %arg4[%c0_4, %c0_5] : memref<32x128xi8, #tpu.memory_space<vmem>>, vector<32x128xi8>
    %7 = arith.sitofp %6 : vector<32x128xi8> to vector<32x128xf32>
    %c0_6 = arith.constant 0 : index
    %c0_7 = arith.constant 0 : index
    %8 = vector.load %arg7[%c0_6, %c0_7] : memref<128x128xf32, #tpu.memory_space<vmem>>, vector<128x128xf32>
    %cst_8 = arith.constant dense<0.000000e+00> : vector<128x128xf32>
    %9 = tpu.matmul %7, %5, %cst_8 {dimension_numbers = #tpu.dot_dimension_numbers<[0], [0], [1], [1], [0, 1, 1, 1], [], []>} : vector<32x128xf32>, vector<32x128xf32>, vector<128x128xf32> -> vector<128x128xf32>
    %10 = arith.addf %8, %9 : vector<128x128xf32>
    %c0_9 = arith.constant 0 : index
    %c0_10 = arith.constant 0 : index
    %11 = vector.load %arg7[%c0_9, %c0_10] : memref<128x128xf32, #tpu.memory_space<vmem>>, vector<128x128xf32>
    tpu.vector_store %arg7[%c0_9, %c0_10], %10 {strides = array<i32>} : memref<128x128xf32, #tpu.memory_space<vmem>>, vector<128x128xf32>,
    %c1_i32 = arith.constant 1 : i32
    %12 = arith.cmpi eq, %arg1, %c1_i32 : i32
    %13 = arith.extui %12 : i1 to i32
    %c0_i32_11 = arith.constant 0 : i32
    %14 = arith.cmpi ne, %13, %c0_i32_11 : i32
    scf.if %14 {
      %c0_12 = arith.constant 0 : index
      %c0_13 = arith.constant 0 : index
      %15 = vector.load %arg7[%c0_12, %c0_13] : memref<128x128xf32, #tpu.memory_space<vmem>>, vector<128x128xf32>
      %c0_14 = arith.constant 0 : index
      %c0_15 = arith.constant 0 : index
      %16 = vector.load %arg5[%c0_14, %c0_15] : memref<128x1xf32, #tpu.memory_space<vmem>>, vector<128x1xf32>
      %17 = vector.broadcast %16 : vector<128x1xf32> to vector<128x128xf32>
      %18 = arith.mulf %15, %17 : vector<128x128xf32>
      %c0_16 = arith.constant 0 : index
      %c0_17 = arith.constant 0 : index
      %19 = vector.load %arg6[%c0_16, %c0_17] : memref<128x128xf32, #tpu.memory_space<vmem>>, vector<128x128xf32>
      tpu.vector_store %arg6[%c0_16, %c0_17], %18 {strides = array<i32>} : memref<128x128xf32, #tpu.memory_space<vmem>>, vector<128x128xf32>,
    } else {
    }
    return
  }
  func.func @transform_0(%arg0: i32, %arg1: i32) -> (i32, i32) {
    %c0_i32 = arith.constant 0 : i32
    %c0_i32_0 = arith.constant 0 : i32
    return %arg1, %c0_i32 : i32, i32
  }
  func.func @transform_1(%arg0: i32, %arg1: i32) -> (i32, i32) {
    %c0_i32 = arith.constant 0 : i32
    %c0_i32_0 = arith.constant 0 : i32
    return %c0_i32, %arg0 : i32, i32
  }
  func.func @transform_2(%arg0: i32, %arg1: i32) -> (i32, i32) {
    %c0_i32 = arith.constant 0 : i32
    %c0_i32_0 = arith.constant 0 : i32
    return %arg1, %c0_i32 : i32, i32
  }
  func.func @transform_3(%arg0: i32, %arg1: i32) -> (i32, i32) {
    %c0_i32 = arith.constant 0 : i32
    %c0_i32_0 = arith.constant 0 : i32
    %c0_i32_1 = arith.constant 0 : i32
    return %c0_i32, %c0_i32_0 : i32, i32
  }
  func.func @transform_4(%arg0: i32, %arg1: i32) -> (i32, i32) {
    %c0_i32 = arith.constant 0 : i32
    %c0_i32_0 = arith.constant 0 : i32
    return %c0_i32, %arg0 : i32, i32
  }
}

</mosaic_0001>

<bundles_post_ra>
// kernel: tpu_custom_call.1
= control target key start
LH: loop header
LB: loop body
LE: loop exit
PB: predicated region body
PF: predicated region fallthrough
CT: control target
= control target key end

     0   :  { %9 = vsyncpa [#allocation4], 0  ;;  %s1620_s0 = inlined_call_operand.vmem [shape: f32[64,128], index: 0, kind: input, shape index: {}]   ;;  %s1621_s1 = inlined_call_operand.hbm [shape: f32[128,256], index: 1, kind: input, shape index: {}]   ;;  %s1622_s2 = inlined_call_operand.vmem [shape: s8[64,128], index: 2, kind: input, shape index: {}]   ;;  %s1623_s3 = inlined_call_operand.vmem [shape: f32[128,1], index: 3, kind: input, shape index: {}]   ;;  %s1624_s4 = inlined_call_operand.hbm [shape: f32[128,256], index: 4, kind: output, shape index: {}]  }
   0x1   :  { %11 = vsyncpa [#allocation4 + $0x1], 0 }
   0x2   :  { %12 = vsyncpa [#allocation5], 0 }
   0x3   :  { %14 = vsyncpa [#allocation5 + $0x1], 0  ;;  %s1337_s15 = smov 0   ;;  %s1339_s16 = smov 0  }
   0x4   :  { %s1341_s17 = smov 0   ;;  %s1343_s18 = smov 0  }
   0x5   :  { %s1345_s19 = smov 0   ;;  %s1347_s20 = smov 0  }
   0x6   :  { %s1349_s21 = smov 0   ;;  %s1351_s22 = smov 0  }
   0x7 LB: > { %s943_s23 = sadd.s32 4294967295, %s1300_s22   ;;  %s944_s24 = sadd.s32 4294967294, %s1300_s22   ;;  %s1300_s22 = sphi %s1351_s22, %s20_s22   ;;  %s1296_s21 = sphi %s1349_s21, %s1641_s21   ;;  %s1292_s20 = sphi %s1347_s20, %s1640_s20   ;;  %s1288_s19 = sphi %s1345_s19, %s1639_s19   ;;  %s1284_s18 = sphi %s1343_s18, %s1638_s18   ;;  %s1280_s17 = sphi %s1341_s17, %s1637_s17   ;;  %s1276_s16 = sphi %s1339_s16, %s1636_s16   ;;  %s1272_s15 = sphi %s1337_s15, %s1635_s15  }
   0x8   : > { %s29_s25 = sadd.s32 1, %s1292_s20  ;;  %s32_s26 = sadd.s32 1, %s1296_s21 }
   0x9   : > { %p30_p0 = scmp.ge.s32.totalorder %s29_s25, 2  ;;  %s65_s27 = sadd.s32 1, %s1280_s17 }
   0xa   : > { %p72_p1 = scmp.ne.s32.totalorder %s1280_s17, %s1276_s16  ;;  %p73_p2 = scmp.eq.s32.totalorder %s1300_s22, 0 }
   0xb   : > { %s1643_s25 = smov (%p30_p0, %s29_s25), 0  ;;  %s1645_s26 = smov (!%p30_p0, %s32_s26), %s1296_s21 }
   0xc   : > { %1626 = sst [smem:[#allocation9_spill]] %s1643_s25  ;;  %p1388_p3 = por %p73_p2, %p72_p1 }
   0xd   : > { %p78_p4 = scmp.ne.s32.totalorder %s1276_s16, %s1272_s15  ;;  %p34_p5 = scmp.ge.s32.totalorder %s1645_s26, 2 }
   0xe   : > { %p79_p6 = scmp.eq.s32.totalorder %s943_s23, 0  ;;  %p149_p7 = scmp.eq.s32.totalorder %s943_s23, 3 }
   0xf   : > { %p155_p8 = scmp.eq.s32.totalorder %s944_s24, 3  ;;  %s1647_s26 = smov (%p34_p5, %s1645_s26), 0 }
  0x10   : > { %1628 = sst [smem:[#allocation10_spill]] %s1647_s26  ;;  %p1396_p9 = por %p79_p6, %p78_p4 }
  0x11   : > { %p1400_p10 = por %p149_p7, %p72_p1  ;;  %s62_s5 = ssub.s32 %s1296_s21, %s1647_s26 }
  0x12   : > { %p1406_p11 = por %p155_p8, %p78_p4  ;;  %p63_p12 = scmp.eq.s32.totalorder %s62_s5, 0 }
  0x13   : > { %p1099_p13 = scmp.lt.s32.totalorder %s1300_s22, 4  ;;  %s187_s7 = sand.u32 1, %s1280_s17  }
  0x14   : > { %s1413_s8 = scalar_select %p63_p12, %s1280_s17, %s65_s27  }
  0x15   : > { %s947_s9 = sshll.u32 %s187_s7, 7  ;;  %s948_s10 = sshll.u32 %s1296_s21, 7 }
  0x16   : > { %s196_s13 = scalar_lea.hbm %s1621_s1, %s948_s10  ;;  %s191_s14 = scalar_lea.vmem [#allocation3], %s947_s9 }
  0x17   : > { %s197_s23 = sshll.u32 %s191_s14, 4  ;;  %p1421_p0 = pnand %p1099_p13, %p1388_p3  ;;  %s198_s23 = int_to_ptr.vmem [resolvable:$true] %s197_s23 }
  0x18   : > { %s188_s5 = scalar_lea.sflag [#allocation4], %s187_s7  ;;  %s1189_s27 = scalar_lea.vmem %s198_s23, 2048 }
  0x19   : > { %p1178_p1 = pneg %p1421_p0  ;;  %p1190_p2 = scmp.ne.s32.totalorder %s198_s23, %s1189_s27 }
  0x1a   : > { %s1302_s26 = smov [#allocation3]  }
  0x1b   : > { %p1192_p4 = pnand %p1190_p2, %p1178_p1  ;;  %s1194_s25 = sshll.u32 %s1302_s26, 4  ;;  %s1195_s25 = int_to_ptr.vmem [resolvable:$false] %s1194_s25 }
  0x1c   : > { %s1196_s10 = scalar_lea.vmem %s1195_s25, 4096  ;;  %p1197_p6 = scmp.lt.s32.totalorder %s198_s23, %s1195_s25 }
  0x1d   : > { %p1193_p5 = pneg %p1192_p4  ;;  %p1198_p7 = scmp.lt.s32.totalorder %s1196_s10, %s1189_s27 }
  0x1f   : > { %p1199_p8 = por %p1198_p7, %p1197_p6 }
  0x21   : > { %p1200_p12 = pnand %p1199_p8, %p1193_p5 }
  0x23   : > { %1203 = shalt.err (!%p1200_p12)
}
  0x24   : > { %s1303_s28 = smov 256   ;;  %s1304_s7 = smov 128  }
  0x25   : > { %s1305_s9 = smov 8   ;;  %p949_p3 = scmp.ge.s32.totalorder %s1300_s22, 1 }
  0x26   : > { %1094 = dma.hbm_to_vmem [thread:$0]  (!%p1421_p0), %s196_s13, 2048, %s198_s23, %s188_s5, %s1303_s28, %s1304_s7, %s1305_s9  }
  0x27   : > { %p212_p13 = scmp.lt.s32.totalorder %s1300_s22, 5 }
  0x29   : > { %p213_p1 = pnand %p949_p3, %p212_p13 }
  0x2a   : > { %s1432_s26 = sand.u32 (!%p213_p1), 1, %s1276_s16  }
  0x2b   : > { %216 = sbr.rel (%p213_p1) target bundleno = 715 (0x2cb), region = 36  ;;  %s950_s25 = sshll.u32 (!%p213_p1), %s1432_s26, 7 }
  0x2c   : > { %s219_s11 = scalar_lea.sflag (!%p213_p1), [#allocation4], %s1432_s26  ;;  %s1436_s12 = scalar_lea.vmem (!%p213_p1), [#allocation3], %s950_s25 }
  0x30   : > { %1263 = dma.done.wait (%p1396_p9), %s219_s11, 2048  }
  0x31   : > { %1265 = vsyncadd (%p1396_p9), %s219_s11, 4294965248  ;;  %s952_s13 = sshll.u32 %s1284_s18, 2  ;;  %p262_p2 = scmp.lt.s32.totalorder %s1284_s18, 1 }
  0x32   : > { %p257_p0 = scmp.lt.s32.totalorder %s952_s13, 7  ;;  %s1455_s9 = scalar_lea.vmem [#allocation6], %s950_s25 }
  0x33   : > { %s263_s14 = scalar_select %p262_p2, %s1284_s18, 1 }
  0x34   : > { %s1649_s13 = smov (!%p257_p0, %s952_s13), 7  ;;  %p955_p9 = scmp.ne.s32.totalorder %s1284_s18, 0 }
  0x35   : > { %s953_s23 = sshll.u32 %s1649_s13, 3  ;;  %s954_s10 = sshll.u32 %s263_s14, 3 }
  0x36   : > { %s1448_s27 = scalar_lea.vmem %s1620_s0, %s953_s23  ;;  %s1453_s29 = scalar_lea.vmem %s1622_s2, %s954_s10 }
  0x37   : > { %269 = sbr.rel (%p955_p9) target bundleno = 69 (0x45), region = 44 }
  0x3c   : > { %v1306_v0 = vmov 0.0  }
  0x3d   : > { %270 = vst [vmem:[#allocation2 + $0x30] sm:$0xff] %v1306_v0  ;;  %271 = vst [vmem:[#allocation2] sm:$0xff] %v1306_v0 }
  0x3e   : > { %272 = vst [vmem:[#allocation2 + $0x58] sm:$0xff] %v1306_v0  ;;  %273 = vst [vmem:[#allocation2 + $0x18] sm:$0xff] %v1306_v0 }
  0x3f   : > { %274 = vst [vmem:[#allocation2 + $0x50] sm:$0xff] %v1306_v0  ;;  %275 = vst [vmem:[#allocation2 + $0x68] sm:$0xff] %v1306_v0 }
  0x40   : > { %276 = vst [vmem:[#allocation2 + $0x8] sm:$0xff] %v1306_v0  ;;  %277 = vst [vmem:[#allocation2 + $0x48] sm:$0xff] %v1306_v0 }
  0x41   : > { %278 = vst [vmem:[#allocation2 + $0x40] sm:$0xff] %v1306_v0  ;;  %279 = vst [vmem:[#allocation2 + $0x20] sm:$0xff] %v1306_v0 }
  0x42   : > { %280 = vst [vmem:[#allocation2 + $0x10] sm:$0xff] %v1306_v0  ;;  %281 = vst [vmem:[#allocation2 + $0x38] sm:$0xff] %v1306_v0 }
  0x43   : > { %282 = vst [vmem:[#allocation2 + $0x60] sm:$0xff] %v1306_v0  ;;  %283 = vst [vmem:[#allocation2 + $0x70] sm:$0xff] %v1306_v0 }
  0x44   : > { %284 = vst [vmem:[#allocation2 + $0x78] sm:$0xff] %v1306_v0  ;;  %285 = vst [vmem:[#allocation2 + $0x28] sm:$0xff] %v1306_v0 }
  0x45 PF: > { %v305_v1 = vld [vmem:[%s1436_s12 + $0x78] sm:$0xff]  ;;  %v304_v2 = vld [vmem:[%s1436_s12 + $0x70] sm:$0xff]  ;;  %v303_v3 = vld [vmem:[%s1436_s12 + $0x68] sm:$0xff]  ;;  %vm448_vm0 = vcmask 261120   ;;  %p972_p4 = scmp.ne.s32.totalorder %s1284_s18, 1 }
  0x46   : > { %1017 = vmatprep.subr.mxu0 %v305_v1  ;;  %v302_v4 = vld [vmem:[%s1436_s12 + $0x60] sm:$0xff]  ;;  %v301_v6 = vld [vmem:[%s1436_s12 + $0x58] sm:$0xff]  ;;  %v300_v10 = vld [vmem:[%s1436_s12 + $0x50] sm:$0xff] }
  0x47   : > { %1018 = vmatpush3.msra.mxu0 %v305_v1  ;;  %v286_v5 = vld [vmem:[%s1448_s27] sm:$0xff]  ;;  %v299_v12 = vld [vmem:[%s1436_s12 + $0x48] sm:$0xff]  ;;  %v297_v16 = vld [vmem:[%s1436_s12 + $0x38] sm:$0xff] }
  0x48   : > { %1019 = vmatprep.subr.mxu0 %v304_v2  ;;  %1049 = vmatprep.mubr.f32.mxu0 %v286_v5  ;;  %v391_v7 = vld [vmem:[%s1453_s29] sm:$0xff]  ;;  %v296_v19 = vld [vmem:[%s1436_s12 + $0x30] sm:$0xff]  ;;  %v295_v20 = vld [vmem:[%s1436_s12 + $0x28] sm:$0xff] }
  0x49   : > { %1020 = vmatpush3.msra.mxu0 %v304_v2  ;;  %v392_v8 = vunpack.c.0.s8 %v391_v7  ;;  %v393_v9 = vunpack.c.1.s8 %v391_v7  ;;  %v394_v14 = vunpack.c.2.s8 %v391_v7  ;;  %v298_v15 = vld [vmem:[%s1436_s12 + $0x40] sm:$0xff]  ;;  %v395_v18 = vunpack.c.3.s8 %v391_v7  ;;  %v293_v23 = vld [vmem:[%s1436_s12 + $0x18] sm:$0xff]  ;;  %v292_v24 = vld [vmem:[%s1436_s12 + $0x10] sm:$0xff] }
  0x4a   : > { %1021 = vmatprep.subr.mxu0 %v303_v3  ;;  %v294_v22 = vld [vmem:[%s1436_s12 + $0x20] sm:$0xff]  ;;  %v291_v25 = vld [vmem:[%s1436_s12 + $0x8] sm:$0xff]  ;;  %v288_v28 = vld [vmem:[%s1448_s27 + $0x10] sm:$0xff] }
  0x4b   : > { %1022 = vmatpush3.msra.mxu0 %v303_v3  ;;  %v396_v11 = vcvt.s32.f32 %v392_v8  ;;  %v397_v13 = vcvt.s32.f32 %v393_v9  ;;  %v398_v17 = vcvt.s32.f32 %v394_v14  ;;  %v399_v21 = vcvt.s32.f32 %v395_v18  ;;  %v290_v26 = vld [vmem:[%s1436_s12] sm:$0xff]  ;;  %v287_v27 = vld [vmem:[%s1448_s27 + $0x8] sm:$0xff]  ;;  %v289_v29 = vld [vmem:[%s1448_s27 + $0x18] sm:$0xff] }
  0x4c   : > { %1023 = vmatprep.subr.mxu0 %v302_v4  ;;  %v401_v50 = vld [vmem:[#allocation2] sm:$0xff]  ;;  %v400_v52 = vld [vmem:[#allocation2 + $0x30] sm:$0xff]  ;;  %v403_v55 = vld [vmem:[#allocation2 + $0x18] sm:$0xff] }
  0x4d   : > { %1024 = vmatpush3.msra.mxu0 %v302_v4  ;;  %416 = vxpose.xlu0.b32.start [1/4] (short) %v396_v11, 128  ;;  %v402_v58 = vld [vmem:[#allocation2 + $0x58] sm:$0xff]  ;;  %v405_v61 = vld [vmem:[#allocation2 + $0x68] sm:$0xff]  ;;  %v404_v0 = vld [vmem:[#allocation2 + $0x50] sm:$0xff] }
  0x4e   : > { %1025 = vmatprep.subr.mxu0 %v301_v6  ;;  %v407_v3 = vld [vmem:[#allocation2 + $0x48] sm:$0xff]  ;;  %v409_v9 = vld [vmem:[#allocation2 + $0x20] sm:$0xff]  ;;  %v410_v18 = vld [vmem:[#allocation2 + $0x10] sm:$0xff] }
  0x4f   : > { %1026 = vmatpush3.msra.mxu0 %v301_v6  ;;  %v406_v6 = vld [vmem:[#allocation2 + $0x8] sm:$0xff] }
  0x50   : > { %1027 = vmatprep.subr.mxu0 %v300_v10 }
  0x51   : > { %1028 = vmatpush3.msra.mxu0 %v300_v10  ;;  %417 = vxpose.xlu0.b32.cont [2/4] (short) %v397_v13, 128 }
  0x52   : > { %1029 = vmatprep.subr.mxu0 %v299_v12 }
  0x53   : > { %1030 = vmatpush3.msra.mxu0 %v299_v12  ;;  %v408_v12 = vld [vmem:[#allocation2 + $0x40] sm:$0xff] }
  0x54   : > { %1031 = vmatprep.subr.mxu0 %v298_v15 }
  0x55   : > { %1032 = vmatpush3.msra.mxu0 %v298_v15  ;;  %418 = vxpose.xlu0.b32.cont [3/4] (short) %v398_v17, 128  ;;  %v411_v15 = vld [vmem:[#allocation2 + $0x38] sm:$0xff] }
  0x56   : > { %1033 = vmatprep.subr.mxu0 %v297_v16 }
  0x57   : > { %1034 = vmatpush3.msra.mxu0 %v297_v16 }
  0x58   : > { %1035 = vmatprep.subr.mxu0 %v296_v19 }
  0x59   : > { %1036 = vmatpush3.msra.mxu0 %v296_v19  ;;  %419 = vxpose.xlu0.b32.end [4/4] (short) %v399_v21, 128  ;;  %v413_v21 = vld [vmem:[#allocation2 + $0x70] sm:$0xff] }
  0x5a   : > { %1037 = vmatprep.subr.mxu0 %v295_v20 }
  0x5b   : > { %1038 = vmatpush3.msra.mxu0 %v295_v20 }
  0x5c   : > { %1039 = vmatprep.subr.mxu0 %v294_v22 }
  0x5d   : > { %1040 = vmatpush3.msra.mxu0 %v294_v22 }
  0x5e   : > { %1041 = vmatprep.subr.mxu0 %v293_v23 }
  0x5f   : > { %1042 = vmatpush3.msra.mxu0 %v293_v23 }
  0x60   : > { %1043 = vmatprep.subr.mxu0 %v292_v24 }
  0x61   : > { %1044 = vmatpush3.msra.mxu0 %v292_v24  ;;  %v412_v24 = vld [vmem:[#allocation2 + $0x60] sm:$0xff] }
  0x62   : > { %1045 = vmatprep.subr.mxu0 %v291_v25 }
  0x63   : > { %1046 = vmatpush3.msra.mxu0 %v291_v25 }
  0x64   : > { %1047 = vmatprep.subr.mxu0 %v290_v26 }
  0x65   : > { %1048 = vmatpush3.msra.mxu0 %v290_v26 }
  0x66   : > { %1050 = vmatmul.mubr.f32.vlgmr.msra.gmra.mxu0 %v287_v27  ;;  %v415_v27 = vld [vmem:[#allocation2 + $0x28] sm:$0xff] }
  0x67   : > { %1052 = vmatprep.mubr.f32.mxu0 %v288_v28 }
  0x6a   : > { %1053 = vmatmul.mubr.f32.gmra.mxu0 %v289_v29 }
  0xc9   : > { %v432_v30 = vpop.trf.xlu0 }
  0xca   : > { %1063 = vmatprep.mubr.msk.f32.mxu1 %vm448_vm0, %v432_v30  ;;  %v414_v30 = vld [vmem:[#allocation2 + $0x78] sm:$0xff] }
  0xcd   : > { %v433_v31 = vpop.trf.xlu0 }
  0xd1   : > { %v434_v32 = vpop.trf.xlu0 }
  0xd5   : > { %v435_v33 = vpop.trf.xlu0 }
  0xd9   : > { %v436_v34 = vpop.trf.xlu0 }
  0xdd   : > { %v437_v35 = vpop.trf.xlu0 }
  0xe1   : > { %v438_v36 = vpop.trf.xlu0 }
  0xe5   : > { %v439_v37 = vpop.trf.xlu0 }
  0xe9   : > { %v440_v38 = vpop.trf.xlu0 }
  0xed   : > { %v441_v41 = vpop.trf.xlu0 }
  0xf1   : > { %v442_v44 = vpop.trf.xlu0 }
  0xf5   : > { %v443_v45 = vpop.trf.xlu0 }
  0xf9   : > { %v444_v46 = vpop.trf.xlu0 }
  0xfd   : > { %v445_v47 = vpop.trf.xlu0 }
 0x101   : > { %v446_v48 = vpop.trf.xlu0 }
 0x105   : > { %v447_v49 = vpop.trf.xlu0 }
 0x126   : > { %v1051_v39 = vpop.f32.mrf.mxu0 }
 0x128   : > { %v372_v40 = vpop.f32.mrf.mxu0 }
 0x12a   : > { %v1054_v42 = vpop.f32.mrf.mxu0 }
 0x12b   : > { %1055 = vmatprep.subr.mxu1 %v1054_v42 }
 0x12c   : > { %v382_v43 = vpop.f32.mrf.mxu0  ;;  %1056 = vmatpush3.msra.mxu1 %v1054_v42 }
 0x12d   : > { %1057 = vmatprep.subr.mxu1 %v382_v43 }
 0x12e   : > { %1058 = vmatpush3.msra.mxu1 %v382_v43 }
 0x12f   : > { %1059 = vmatprep.subr.mxu1 %v1051_v39 }
 0x130   : > { %1060 = vmatpush3.msra.mxu1 %v1051_v39 }
 0x131   : > { %1061 = vmatprep.subr.mxu1 %v372_v40 }
 0x132   : > { %1062 = vmatpush3.msra.mxu1 %v372_v40 }
 0x133   : > { %1064 = vmatmul.mubr.msk.f32.vlgmr.msra.gmra.mxu1 %vm448_vm0, %v433_v31 }
 0x134   : > { %1066 = vmatprep.mubr.msk.f32.mxu1 %vm448_vm0, %v434_v32 }
 0x137   : > { %1067 = vmatmul.mubr.msk.f32.gmra.mxu1 %vm448_vm0, %v435_v33 }
 0x138   : > { %1069 = vmatprep.mubr.msk.f32.mxu1 %vm448_vm0, %v436_v34 }
 0x13b   : > { %1070 = vmatmul.mubr.msk.f32.gmra.mxu1 %vm448_vm0, %v437_v35 }
 0x13c   : > { %1072 = vmatprep.mubr.msk.f32.mxu1 %vm448_vm0, %v438_v36 }
 0x13f   : > { %1073 = vmatmul.mubr.msk.f32.gmra.mxu1 %vm448_vm0, %v439_v37 }
 0x140   : > { %1075 = vmatprep.mubr.msk.f32.mxu1 %vm448_vm0, %v440_v38 }
 0x143   : > { %1076 = vmatmul.mubr.msk.f32.gmra.mxu1 %vm448_vm0, %v441_v41 }
 0x144   : > { %1078 = vmatprep.mubr.msk.f32.mxu1 %vm448_vm0, %v442_v44 }
 0x147   : > { %1079 = vmatmul.mubr.msk.f32.gmra.mxu1 %vm448_vm0, %v443_v45 }
 0x148   : > { %1081 = vmatprep.mubr.msk.f32.mxu1 %vm448_vm0, %v444_v46 }
 0x14b   : > { %1082 = vmatmul.mubr.msk.f32.gmra.mxu1 %vm448_vm0, %v445_v47 }
 0x14c   : > { %1084 = vmatprep.mubr.msk.f32.mxu1 %vm448_vm0, %v446_v48 }
 0x14f   : > { %1085 = vmatmul.mubr.msk.f32.gmra.mxu1 %vm448_vm0, %v447_v49 }
 0x1f3   : > { %v1065_v51 = vpop.f32.mrf.mxu1 }
 0x1f4   : > { %v643_v53 = vadd.f32 %v1065_v51, %v401_v50 }
 0x1f5   : > { %v563_v54 = vpop.f32.mrf.mxu1 }
 0x1f6   : > { %659 = vst [vmem:[#allocation2] sm:$0xff] %v643_v53  ;;  %v642_v56 = vadd.f32 %v563_v54, %v400_v52 }
 0x1f7   : > { %v1068_v57 = vpop.f32.mrf.mxu1 }
 0x1f8   : > { %658 = vst [vmem:[#allocation2 + $0x30] sm:$0xff] %v642_v56  ;;  %v645_v59 = vadd.f32 %v1068_v57, %v403_v55 }
 0x1f9   : > { %v573_v60 = vpop.f32.mrf.mxu1 }
 0x1fa   : > { %661 = vst [vmem:[#allocation2 + $0x18] sm:$0xff] %v645_v59  ;;  %v644_v62 = vadd.f32 %v573_v60, %v402_v58 }
 0x1fb   : > { %v1071_v63 = vpop.f32.mrf.mxu1 }
 0x1fc   : > { %660 = vst [vmem:[#allocation2 + $0x58] sm:$0xff] %v644_v62  ;;  %v647_v1 = vadd.f32 %v1071_v63, %v405_v61 }
 0x1fd   : > { %v583_v2 = vpop.f32.mrf.mxu1 }
 0x1fe   : > { %663 = vst [vmem:[#allocation2 + $0x68] sm:$0xff] %v647_v1  ;;  %v646_v4 = vadd.f32 %v583_v2, %v404_v0 }
 0x1ff   : > { %v1074_v5 = vpop.f32.mrf.mxu1 }
 0x200   : > { %662 = vst [vmem:[#allocation2 + $0x50] sm:$0xff] %v646_v4  ;;  %v649_v7 = vadd.f32 %v1074_v5, %v407_v3 }
 0x201   : > { %v593_v8 = vpop.f32.mrf.mxu1 }
 0x202   : > { %665 = vst [vmem:[#allocation2 + $0x48] sm:$0xff] %v649_v7  ;;  %v648_v10 = vadd.f32 %v593_v8, %v406_v6 }
 0x203   : > { %v1077_v11 = vpop.f32.mrf.mxu1 }
 0x204   : > { %664 = vst [vmem:[#allocation2 + $0x8] sm:$0xff] %v648_v10  ;;  %v651_v13 = vadd.f32 %v1077_v11, %v409_v9 }
 0x205   : > { %v603_v14 = vpop.f32.mrf.mxu1 }
 0x206   : > { %667 = vst [vmem:[#allocation2 + $0x20] sm:$0xff] %v651_v13  ;;  %v650_v16 = vadd.f32 %v603_v14, %v408_v12 }
 0x207   : > { %v1080_v17 = vpop.f32.mrf.mxu1 }
 0x208   : > { %666 = vst [vmem:[#allocation2 + $0x40] sm:$0xff] %v650_v16  ;;  %v653_v19 = vadd.f32 %v1080_v17, %v411_v15 }
 0x209   : > { %v613_v20 = vpop.f32.mrf.mxu1 }
 0x20a   : > { %669 = vst [vmem:[#allocation2 + $0x38] sm:$0xff] %v653_v19  ;;  %v652_v22 = vadd.f32 %v613_v20, %v410_v18 }
 0x20b   : > { %v1083_v23 = vpop.f32.mrf.mxu1 }
 0x20c   : > { %668 = vst [vmem:[#allocation2 + $0x10] sm:$0xff] %v652_v22  ;;  %v655_v25 = vadd.f32 %v1083_v23, %v413_v21 }
 0x20d   : > { %v623_v26 = vpop.f32.mrf.mxu1 }
 0x20e   : > { %671 = vst [vmem:[#allocation2 + $0x70] sm:$0xff] %v655_v25  ;;  %v654_v28 = vadd.f32 %v623_v26, %v412_v24 }
 0x20f   : > { %v1086_v29 = vpop.f32.mrf.mxu1 }
 0x210   : > { %670 = vst [vmem:[#allocation2 + $0x60] sm:$0xff] %v654_v28  ;;  %v657_v31 = vadd.f32 %v1086_v29, %v415_v27  ;;  %677 = sbr.rel (%p972_p4) target bundleno = 690 (0x2b2), region = 48 }
 0x211   : > { %v633_v32 = vpop.f32.mrf.mxu1 }
 0x212   : > { %673 = vst [vmem:[#allocation2 + $0x28] sm:$0xff] %v657_v31  ;;  %v656_v33 = vadd.f32 %v633_v32, %v414_v30 }
 0x214   : > { %672 = vst [vmem:[#allocation2 + $0x78] sm:$0xff] %v656_v33 }
 0x215   : > { %v696_v34 = vld [vmem:[%s1623_s3 + $0x10] sm:$0xff]  ;;  %v694_v35 = vld [vmem:[%s1623_s3] sm:$0xff]  ;;  %v1307_v36 = vmov 0   ;;  %v697_v37 = vld [vmem:[%s1623_s3 + $0x18] sm:$0xff] }
 0x216   : > { %1175 = vset.pattern.permute.xlu1 %v1307_v36  ;;  %1174 = vset.pattern.permute.xlu0 %v1307_v36  ;;  %v695_v38 = vld [vmem:[%s1623_s3 + $0x8] sm:$0xff]  ;;  %v698_v40 = vld [vmem:[%s1623_s3 + $0x20] sm:$0xff]  ;;  %v701_v41 = vld [vmem:[%s1623_s3 + $0x38] sm:$0xff] }
 0x217   : > { %722 = vperm.xlu1 %1175, %v696_v34   ;;  %712 = vperm.xlu0 %1174, %v694_v35   ;;  %v699_v39 = vld [vmem:[%s1623_s3 + $0x28] sm:$0xff]  ;;  %v700_v42 = vld [vmem:[%s1623_s3 + $0x30] sm:$0xff]  ;;  %v702_v44 = vld [vmem:[%s1623_s3 + $0x40] sm:$0xff] }
 0x218   : > { %v703_v43 = vld [vmem:[%s1623_s3 + $0x48] sm:$0xff]  ;;  %v705_v45 = vld [vmem:[%s1623_s3 + $0x58] sm:$0xff]  ;;  %v704_v46 = vld [vmem:[%s1623_s3 + $0x50] sm:$0xff] }
 0x219   : > { %v707_v47 = vld [vmem:[%s1623_s3 + $0x68] sm:$0xff]  ;;  %v706_v48 = vld [vmem:[%s1623_s3 + $0x60] sm:$0xff]  ;;  %v709_v49 = vld [vmem:[%s1623_s3 + $0x78] sm:$0xff] }
 0x21a   : > { %v708_v50 = vld [vmem:[%s1623_s3 + $0x70] sm:$0xff]  ;;  %v680_v51 = vld [vmem:[#allocation2 + $0x58] sm:$0xff]  ;;  %v679_v58 = vld [vmem:[#allocation2] sm:$0xff] }
 0x21b   : > { %727 = vperm.xlu1 %1175, %v697_v37   ;;  %717 = vperm.xlu0 %1174, %v695_v38   ;;  %v678_v52 = vld [vmem:[#allocation2 + $0x30] sm:$0xff]  ;;  %v681_v57 = vld [vmem:[#allocation2 + $0x18] sm:$0xff]  ;;  %v683_v63 = vld [vmem:[#allocation2 + $0x68] sm:$0xff] }
 0x21c   : > { %v682_v0 = vld [vmem:[#allocation2 + $0x50] sm:$0xff]  ;;  %v685_v5 = vld [vmem:[#allocation2 + $0x48] sm:$0xff]  ;;  %v687_v11 = vld [vmem:[#allocation2 + $0x20] sm:$0xff] }
 0x21d   : > { %v684_v6 = vld [vmem:[#allocation2 + $0x8] sm:$0xff]  ;;  %v686_v12 = vld [vmem:[#allocation2 + $0x40] sm:$0xff]  ;;  %v689_v17 = vld [vmem:[#allocation2 + $0x38] sm:$0xff] }
 0x21e   : > { %v688_v18 = vld [vmem:[#allocation2 + $0x10] sm:$0xff]  ;;  %v690_v24 = vld [vmem:[#allocation2 + $0x60] sm:$0xff]  ;;  %v693_v29 = vld [vmem:[#allocation2 + $0x28] sm:$0xff] }
 0x21f   : > { %737 = vperm.xlu1 %1175, %v699_v39   ;;  %732 = vperm.xlu0 %1174, %v698_v40   ;;  %v691_v23 = vld [vmem:[#allocation2 + $0x70] sm:$0xff]  ;;  %v692_v30 = vld [vmem:[#allocation2 + $0x78] sm:$0xff] }
 0x223   : > { %747 = vperm.xlu1 %1175, %v701_v41   ;;  %742 = vperm.xlu0 %1174, %v700_v42  }
 0x227   : > { %757 = vperm.xlu1 %1175, %v703_v43   ;;  %752 = vperm.xlu0 %1174, %v702_v44  }
 0x22b   : > { %767 = vperm.xlu1 %1175, %v705_v45   ;;  %762 = vperm.xlu0 %1174, %v704_v46  }
 0x22f   : > { %777 = vperm.xlu1 %1175, %v707_v47   ;;  %772 = vperm.xlu0 %1174, %v706_v48  }
 0x233   : > { %787 = vperm.xlu1 %1175, %v709_v49   ;;  %782 = vperm.xlu0 %1174, %v708_v50  }
 0x292   : > { %v723_v53 = vpop.permute.xlu1 %722  ;;  %v713_v54 = vpop.permute.xlu0 %712 }
 0x293   : > { %v792_v55 = vmul.f32 %v723_v53, %v680_v51  ;;  %v790_v56 = vmul.f32 %v713_v54, %v678_v52 }
 0x295   : > { %808 = vst [vmem:[%s1455_s9 + $0x10] sm:$0xff] %v792_v55  ;;  %806 = vst [vmem:[%s1455_s9] sm:$0xff] %v790_v56 }
 0x296   : > { %v728_v59 = vpop.permute.xlu1 %727  ;;  %v718_v60 = vpop.permute.xlu0 %717 }
 0x297   : > { %v793_v61 = vmul.f32 %v728_v59, %v681_v57  ;;  %v791_v62 = vmul.f32 %v718_v60, %v679_v58 }
 0x299   : > { %809 = vst [vmem:[%s1455_s9 + $0x18] sm:$0xff] %v793_v61  ;;  %807 = vst [vmem:[%s1455_s9 + $0x8] sm:$0xff] %v791_v62 }
 0x29a   : > { %v738_v1 = vpop.permute.xlu1 %737  ;;  %v733_v2 = vpop.permute.xlu0 %732 }
 0x29b   : > { %v795_v3 = vmul.f32 %v738_v1, %v683_v63  ;;  %v794_v4 = vmul.f32 %v733_v2, %v682_v0 }
 0x29d   : > { %811 = vst [vmem:[%s1455_s9 + $0x28] sm:$0xff] %v795_v3  ;;  %810 = vst [vmem:[%s1455_s9 + $0x20] sm:$0xff] %v794_v4 }
 0x29e   : > { %v748_v7 = vpop.permute.xlu1 %747  ;;  %v743_v8 = vpop.permute.xlu0 %742 }
 0x29f   : > { %v797_v9 = vmul.f32 %v748_v7, %v685_v5  ;;  %v796_v10 = vmul.f32 %v743_v8, %v684_v6 }
 0x2a1   : > { %813 = vst [vmem:[%s1455_s9 + $0x38] sm:$0xff] %v797_v9  ;;  %812 = vst [vmem:[%s1455_s9 + $0x30] sm:$0xff] %v796_v10 }
 0x2a2   : > { %v758_v13 = vpop.permute.xlu1 %757  ;;  %v753_v14 = vpop.permute.xlu0 %752 }
 0x2a3   : > { %v799_v15 = vmul.f32 %v758_v13, %v687_v11  ;;  %v798_v16 = vmul.f32 %v753_v14, %v686_v12 }
 0x2a5   : > { %815 = vst [vmem:[%s1455_s9 + $0x48] sm:$0xff] %v799_v15  ;;  %814 = vst [vmem:[%s1455_s9 + $0x40] sm:$0xff] %v798_v16 }
 0x2a6   : > { %v768_v19 = vpop.permute.xlu1 %767  ;;  %v763_v20 = vpop.permute.xlu0 %762 }
 0x2a7   : > { %v801_v21 = vmul.f32 %v768_v19, %v689_v17  ;;  %v800_v22 = vmul.f32 %v763_v20, %v688_v18 }
 0x2a9   : > { %817 = vst [vmem:[%s1455_s9 + $0x58] sm:$0xff] %v801_v21  ;;  %816 = vst [vmem:[%s1455_s9 + $0x50] sm:$0xff] %v800_v22 }
 0x2aa   : > { %v778_v25 = vpop.permute.xlu1 %777  ;;  %v773_v26 = vpop.permute.xlu0 %772 }
 0x2ab   : > { %v803_v27 = vmul.f32 %v778_v25, %v691_v23  ;;  %v802_v28 = vmul.f32 %v773_v26, %v690_v24 }
 0x2ad   : > { %819 = vst [vmem:[%s1455_s9 + $0x68] sm:$0xff] %v803_v27  ;;  %818 = vst [vmem:[%s1455_s9 + $0x60] sm:$0xff] %v802_v28 }
 0x2ae   : > { %v788_v31 = vpop.permute.xlu1 %787  ;;  %v783_v32 = vpop.permute.xlu0 %782 }
 0x2af   : > { %v805_v33 = vmul.f32 %v788_v31, %v693_v29  ;;  %v804_v34 = vmul.f32 %v783_v32, %v692_v30 }
 0x2b1   : > { %821 = vst [vmem:[%s1455_s9 + $0x78] sm:$0xff] %v805_v33  ;;  %820 = vst [vmem:[%s1455_s9 + $0x70] sm:$0xff] %v804_v34 }
 0x2b2 PF: > { %s974_s14 = sshll.u32 %s1288_s19, 7  ;;  %s835_s5 = sshll.u32 %s1455_s9, 4  ;;  %s1567_s5 = int_to_ptr.vmem [resolvable:$true] %s835_s5 }
 0x2b3   : > { %s1564_s18 = scalar_lea.hbm %s1624_s4, %s974_s14  ;;  %s823_s27 = scalar_lea.sflag [#allocation5], %s1432_s26 }
 0x2b4   : > { %s1204_s10 = scalar_lea.vmem %s1567_s5, 2048  ;;  %s1308_s28 = smov [#allocation6]  }
 0x2b5   : > { %p1205_p5 = scmp.ne.s32.totalorder %s1567_s5, %s1204_s10  ;;  %s1208_s7 = sshll.u32 %s1308_s28, 4  ;;  %s1209_s7 = int_to_ptr.vmem [resolvable:$false] %s1208_s7 }
 0x2b6   : > { %s1210_s19 = scalar_lea.vmem %s1209_s7, 4096  ;;  %p1211_p8 = scmp.lt.s32.totalorder %s1567_s5, %s1209_s7 }
 0x2b7   : > { %p1206_p6 = pnand %p1205_p5, %p1400_p10  ;;  %p1212_p12 = scmp.lt.s32.totalorder %s1210_s19, %s1204_s10 }
 0x2b9   : > { %p1207_p7 = pneg %p1206_p6  ;;  %p1213_p3 = por %p1212_p12, %p1211_p8 }
 0x2bb   : > { %p1214_p13 = pnand %p1213_p3, %p1207_p7 }
 0x2bd   : > { %1217 = shalt.err (!%p1214_p13)
}
 0x2be   : > { %s1218_s9 = scalar_lea.hbm %s1564_s18, 2048  ;;  %s1222_s11 = scalar_lea.hbm %s1624_s4, 4096 }
 0x2bf   : > { %p1219_p1 = scmp.ne.s32.totalorder %s1564_s18, %s1218_s9  ;;  %p1223_p9 = scmp.lt.s32.totalorder %s1564_s18, %s1624_s4 }
 0x2c0   : > { %p1224_p4 = scmp.lt.s32.totalorder %s1222_s11, %s1218_s9 }
 0x2c1   : > { %p1220_p0 = pnand %p1219_p1, %p1400_p10 }
 0x2c2   : > { %p1225_p5 = por %p1224_p4, %p1223_p9 }
 0x2c3   : > { %p1221_p2 = pneg %p1220_p0 }
 0x2c5   : > { %p1226_p6 = pnand %p1225_p5, %p1221_p2 }
 0x2c7   : > { %1229 = shalt.err (!%p1226_p6)
}
 0x2c8   : > { %s1309_s14 = smov 128   ;;  %s1310_s23 = smov 256  }
 0x2c9   : > { %s1311_s24 = smov 8  }
 0x2ca   : > { %1089 = dma.vmem_to_hbm [thread:$0]  (%p1400_p10), %s1567_s5, 2048, %s1564_s18, %s823_s27, %s1309_s14, %s1310_s23, %s1311_s24  }
 0x2cb PF: > { %p1100_p7 = scmp.ge.s32.totalorder %s1300_s22, 2  ;;  %s850_s10 = sand.u32 1, %s1272_s15  }
 0x2cc   : > { %s851_s28 = scalar_lea.sflag [#allocation5], %s850_s10 }
 0x2cd   : > { %p1096_p8 = pnand %p1100_p7, %p1406_p11 }
 0x2cf   : > { %p1097_p12 = pneg %p1096_p8 }
 0x2d1   : > { %1267 = dma.done.wait (%p1097_p12), %s851_s28, 2048  }
 0x2d2   : > { %1269 = vsyncadd (%p1097_p12), %s851_s28, 4294965248  ;;  %s20_s22 = sadd.s32 1, %s1300_s22   ;;  %s1633_s30 = sld [smem:[#allocation9_spill]] }
 0x2d3   : > { %p17_p3 = scmp.ge.s32.totalorder %s20_s22, 6   ;;  %s1634_s26 = sld [smem:[#allocation10_spill]] }
 0x2d4   : > { %s1635_s15 = smov %s1276_s16  ;;  %s1636_s16 = smov %s1280_s17 }
 0x2d5   : > { %s1637_s17 = smov %s1413_s8  ;;  %s1638_s18 = smov %s1292_s20 }
 0x2d6   : > { %s1639_s19 = smov %s1296_s21  ;;  %19 = sbr.rel (!%p17_p3) target bundleno = 7 (0x7), region = 95 }
 0x2d8   : > { %s1640_s20 = smov %s1633_s30 }
 0x2d9   : > { %s1641_s21 = smov %s1634_s26 }
 0x2db   :  { %856 = vsyncpa [#allocation4], 1 }
 0x2dc   :  { %858 = vsyncpa [#allocation4 + $0x1], 1 }
 0x2dd   :  { %859 = vsyncpa [#allocation5], 1 }
 0x2de   :  { %861 = vsyncpa [#allocation5 + $0x1], 1 }

</bundles_post_ra>
